<compile_context>
chip_gen: v6e
topology: v6e:2x2x1
jax: 0.10.0
libtpu: 0.0.40
codegen_flags: <defaults>
</compile_context>

<pallas_src>
import functools

import jax
import jax.numpy as jnp
from jax.experimental import pallas as pl
from jax.experimental.pallas import tpu as pltpu

EPS = 1e-5  # PyTorch nn.LayerNorm default eps


def _layernorm(x, gamma, beta):
    """LayerNorm over the last dim (biased variance, like torch), f32 math."""
    mean = jnp.mean(x, axis=-1, keepdims=True)
    var = jnp.mean((x - mean) ** 2, axis=-1, keepdims=True)
    return (x - mean) * jax.lax.rsqrt(var + EPS) * gamma + beta


# ----------------------------------------------------------------------------
# Kernels
# ----------------------------------------------------------------------------
def embed_kernel(x_ref, g1_ref, b1_ref, w_ref, bw_ref, g2_ref, b2_ref,
                 cls_ref, pos_ref, o_ref, *, n_tok):
    # x_ref block: (1, n_pad, patch_dim) for one batch element.  Row 0 and
    # rows >= n_tok are dummy zero rows (cls slot / sequence padding); rows
    # 1..n_tok-1 hold the flattened patches.
    x = x_ref[0]                                            # (n_pad, patch_dim)
    xn = _layernorm(x, g1_ref[...], b1_ref[...])            # LayerNorm(patch_dim)
    h = jnp.dot(xn.astype(jnp.bfloat16), w_ref[...],
                preferred_element_type=jnp.float32) + bw_ref[...]
    h = _layernorm(h, g2_ref[...], b2_ref[...])             # LayerNorm(dim)

    n_pad = h.shape[0]
    row = jax.lax.broadcasted_iota(jnp.int32, (n_pad, 1), 0)
    tokens = jnp.where(row == 0, cls_ref[...], h)           # cls token at row 0
    tokens = jnp.where(row < n_tok, tokens, 0.0)            # zero the pad rows
    o_ref[0] = tokens + pos_ref[...]                        # pos pad rows are 0


def transformer_kernel(x_ref, ga_ref, ba_ref, wqkv_ref, wo_ref, bo_ref,
                       gf_ref, bf_ref, w1_ref, b1_ref, w2_ref, b2_ref,
                       o_ref, *, heads, dim_head, n_valid):
    # Depth-fused encoder.  Grid = (batch_tiles, depth); weights are indexed by
    # the depth grid axis (BlockSpec squeezes the leading depth dim), and the
    # residual stream lives in the output block, which has a constant index
    # over depth, so it stays resident in VMEM for all layers of this tile.
    layer = pl.program_id(1)

    @pl.when(layer == 0)
    def _():
        o_ref[...] = x_ref[...]                             # embedded tokens

    bb, n, dim = o_ref.shape
    inner = heads * dim_head
    x = o_ref[...].reshape(bb * n, dim)                     # residual, f32

    # ---- pre-LN multi-head self-attention ----
    xn = _layernorm(x, ga_ref[...], ba_ref[...]).astype(jnp.bfloat16)
    # Fused QKV: one wide matmul (M = bb*n, N = 3*inner).  The 1/sqrt(dim_head)
    # scale is pre-folded into the q columns of wqkv at init time.
    y = jnp.dot(xn, wqkv_ref[...], preferred_element_type=jnp.float32)

    key_bias = None
    if n_valid < n:                                         # cheap (1, n) bias
        col = jax.lax.broadcasted_iota(jnp.int32, (1, n), 1)
        key_bias = jnp.where(col < n_valid, 0.0, -1e30).astype(jnp.float32)

    score = functools.partial(                              # q @ k^T per head
        jax.lax.dot_general,
        dimension_numbers=(((2,), (2,)), ((0,), (0,))),
        preferred_element_type=jnp.float32)
    attn_v = functools.partial(                             # p @ v per head
        jax.lax.dot_general,
        dimension_numbers=(((2,), (1,)), ((0,), (0,))),
        preferred_element_type=jnp.float32)

    ctx_rows = []
    for b_ in range(bb):                                    # bb is small/static
        yb = y[b_ * n:(b_ + 1) * n]                         # (n, 3*inner)

        def per_head(which, yb=yb):
            # column order matches torch to_qkv: (q|k|v) major, then head, dh
            return jnp.stack(
                [yb[:, (which * heads + h) * dim_head:
                        (which * heads + h + 1) * dim_head]
                 for h in range(heads)], axis=0)            # (heads, n, dh)

        q = per_head(0).astype(jnp.bfloat16)
        k = per_head(1).astype(jnp.bfloat16)
        v = per_head(2).astype(jnp.bfloat16)

        dots = score(q, k)                                  # (heads, n, n) f32
        if key_bias is not None:
            dots = dots + key_bias                          # mask padded keys
        dots = dots - jnp.max(dots, axis=-1, keepdims=True)
        e = jnp.exp(dots)
        denom = jnp.sum(e, axis=-1, keepdims=True)
        ev = attn_v(e.astype(jnp.bfloat16), v)              # (heads, n, dh) f32
        ev = ev / denom                                      # exact softmax norm
        # lane-concat heads -> (n, inner), matching 'b h n d -> b n (h d)'
        ctx_rows.append(jnp.concatenate([ev[h] for h in range(heads)], axis=-1))
    ctx = ctx_rows[0] if bb == 1 else jnp.concatenate(ctx_rows, axis=0)

    # Fused output projection: single matmul with K = inner.
    attn_out = jnp.dot(ctx.astype(jnp.bfloat16), wo_ref[...],
                       preferred_element_type=jnp.float32) + bo_ref[...]
    x = x + attn_out                                        # residual

    # ---- pre-LN feed-forward ----
    xn2 = _layernorm(x, gf_ref[...], bf_ref[...]).astype(jnp.bfloat16)
    h1 = jnp.dot(xn2, w1_ref[...],
                 preferred_element_type=jnp.float32) + b1_ref[...]
    h1 = jax.nn.gelu(h1, approximate=False)                 # exact erf GELU
    out = jnp.dot(h1.astype(jnp.bfloat16), w2_ref[...],
                  preferred_element_type=jnp.float32) + b2_ref[...]
    o_ref[...] = (x + out).reshape(bb, n, dim)              # residual


def head_kernel(x_ref, g_ref, b_ref, w_ref, bw_ref, o_ref):
    # mlp_head: LayerNorm(dim) -> Linear(dim, num_classes), with the class
    # dimension lane-padded to a multiple of 128 for dense stores.
    x = _layernorm(x_ref[...], g_ref[...], b_ref[...])
    o_ref[...] = jnp.dot(x.astype(jnp.bfloat16), w_ref[...],
                         preferred_element_type=jnp.float32) + bw_ref[...]


# ----------------------------------------------------------------------------
# Wrappers (pallas_call glue)
# ----------------------------------------------------------------------------
def _full_spec(shape):
    zeros = (0,) * len(shape)
    return pl.BlockSpec(shape, lambda i: zeros)


def patch_embed(x_tok, p, cls_tok, pos_pad, *, n_tok):
    b, n_pad, patch_dim = x_tok.shape
    dim = pos_pad.shape[1]
    kernel = functools.partial(embed_kernel, n_tok=n_tok)
    return pl.pallas_call(
        kernel,
        out_shape=jax.ShapeDtypeStruct((b, n_pad, dim), jnp.float32),
        grid=(b,),
        in_specs=[
            pl.BlockSpec((1, n_pad, patch_dim), lambda i: (i, 0, 0)),
            _full_spec((1, patch_dim)), _full_spec((1, patch_dim)),
            _full_spec((patch_dim, dim)), _full_spec((1, dim)),
            _full_spec((1, dim)), _full_spec((1, dim)),
            _full_spec((1, dim)), _full_spec((n_pad, dim)),
        ],
        out_specs=pl.BlockSpec((1, n_pad, dim), lambda i: (i, 0, 0)),
        compiler_params=pltpu.CompilerParams(dimension_semantics=("parallel",)),
    )(x_tok, p['g1'], p['b1'], p['w'], p['bw'], p['g2'], p['b2'],
      cls_tok, pos_pad)


def _pick_block_batch(b, max_bb=8):
    # Largest divisor of b that is <= max_bb: rows per grid step = bb * n_pad.
    return max(d for d in range(1, min(b, max_bb) + 1) if b % d == 0)


def transformer(x, p, *, heads, dim_head, n_valid, block_batch=None):
    b, n, d = x.shape
    depth = p['wqkv'].shape[0]
    inner = heads * dim_head
    mlp = p['w1'].shape[-1]
    bb = block_batch if block_batch is not None else _pick_block_batch(b)
    # TODO(synk): when b // bb == 1 on v7x, add a second parallel axis (split
    # query rows or heads) so both TensorCores get work.
    kernel = functools.partial(transformer_kernel, heads=heads,
                               dim_head=dim_head, n_valid=n_valid)

    def wspec(*shape):
        # Per-layer weight: leading depth dim squeezed, indexed by grid axis 1.
        return pl.BlockSpec((None,) + shape,
                            lambda i, l, _s=shape: (l,) + (0,) * len(_s))

    return pl.pallas_call(
        kernel,
        out_shape=jax.ShapeDtypeStruct((b, n, d), jnp.float32),
        grid=(b // bb, depth),
        in_specs=[
            pl.BlockSpec((bb, n, d), lambda i, l: (i, 0, 0)),   # tokens (l-const)
            wspec(1, d), wspec(1, d),                           # ga, ba
            wspec(d, 3 * inner),                                # wqkv (fused)
            wspec(inner, d), wspec(1, d),                       # wo, bo
            wspec(1, d), wspec(1, d),                           # gf, bf
            wspec(d, mlp), wspec(1, mlp),                       # w1, b1
            wspec(mlp, d), wspec(1, d),                         # w2, b2
        ],
        # Constant index over depth -> residual stream stays resident in VMEM.
        out_specs=pl.BlockSpec((bb, n, d), lambda i, l: (i, 0, 0)),
        compiler_params=pltpu.CompilerParams(
            dimension_semantics=("parallel", "arbitrary"),
            vmem_limit_bytes=48 * 1024 * 1024),
    )(x, p['ga'], p['ba'], p['wqkv'], p['wo'], p['bo'],
      p['gf'], p['bf'], p['w1'], p['b1'], p['w2'], p['b2'])
    # TODO(synk): for ViT-B/L on v7x (64 MiB VMEM), K/N-tile w1/w2/wqkv with an
    # extra trailing 'arbitrary' grid axis + f32 VMEM accumulator, and consider
    # bf16 residual / int8 (v5e/v6e) or fp8 (v7x) weights.


def mlp_head(pooled, p):
    b, _ = pooled.shape
    nc_pad = p['w'].shape[1]
    return pl.pallas_call(
        head_kernel,
        out_shape=jax.ShapeDtypeStruct((b, nc_pad), jnp.float32),
    )(pooled, p['g'], p['b'], p['w'], p['bw'])


# ----------------------------------------------------------------------------
# Full forward + params
# ----------------------------------------------------------------------------
def vit_forward(img, params, *, patch_size, heads, dim_head, num_classes,
                pool='cls'):
    # layout: img is NCHW (b, c, H, W), matching PyTorch.
    b, c, H, W = img.shape
    ph = pw = patch_size
    h, w = H // ph, W // pw
    # Rearrange 'b c (h p1) (w p2) -> b (h w) (p1 p2 c)'  (plain-JAX glue).
    x = img.reshape(b, c, h, ph, w, pw)
    x = jnp.transpose(x, (0, 2, 4, 3, 5, 1))                # (b, h, w, p1, p2, c)
    x = x.reshape(b, h * w, ph * pw * c)                    # (b, n_patches, pd)

    num_patches = h * w
    n_tok = num_patches + 1
    n_pad = ((n_tok + 7) // 8) * 8                          # sublane-align seq
    # Reserve row 0 for the cls token and zero-pad to n_pad rows.
    x_tok = jnp.pad(x, ((0, 0), (1, n_pad - n_tok), (0, 0)))

    pos = params['pos_embedding'][0, :n_tok]                # (n_tok, dim)
    pos_pad = jnp.pad(pos, ((0, n_pad - n_tok), (0, 0)))    # (n_pad, dim)
    cls_tok = params['cls_token'][0]                        # (1, dim)

    x = patch_embed(x_tok, params['patch_embed'], cls_tok, pos_pad,
                    n_tok=n_tok)                            # (b, n_pad, dim)
    # emb_dropout = 0.0 -> identity

    x = transformer(x, params['blocks'], heads=heads, dim_head=dim_head,
                    n_valid=n_tok)                          # all layers, fused

    # Pool before mlp_head (reference: transformer has no final LN; mlp_head
    # supplies LayerNorm -> Linear).  Mean pool ignores padded rows.
    pooled = x[:, :n_tok].mean(axis=1) if pool == 'mean' else x[:, 0]
    logits = mlp_head(pooled, params['head'])               # (b, nc_pad)
    return logits[:, :num_classes]


def init_vit_params(key, *, patch_dim, dim, depth, heads, dim_head, mlp_dim,
                    num_classes, num_patches):
    inner = heads * dim_head
    scale = dim_head ** -0.5
    ks = iter(jax.random.split(key, 4 + 4 * depth))

    def lin(k, shape):
        return jax.random.normal(k, shape, jnp.float32) * 0.02

    nc_pad = ((num_classes + 127) // 128) * 128             # lane-dense head out
    head_w = jnp.zeros((dim, nc_pad), jnp.float32)
    head_w = head_w.at[:, :num_classes].set(lin(next(ks), (dim, num_classes)))

    # Per-layer weights, stacked along a leading depth axis for the fused call.
    wqkv, wo, w1, w2 = [], [], [], []
    for _ in range(depth):
        # to_qkv (no bias), columns ordered (q|k|v, head, dh) == torch layout;
        # the attention scale is folded into the q columns (exact for dh=64).
        wq = lin(next(ks), (dim, 3 * inner))
        wq = wq.at[:, :inner].multiply(scale)
        wqkv.append(wq.astype(jnp.bfloat16))
        wo.append(lin(next(ks), (inner, dim)).astype(jnp.bfloat16))   # to_out
        w1.append(lin(next(ks), (dim, mlp_dim)).astype(jnp.bfloat16))
        w2.append(lin(next(ks), (mlp_dim, dim)).astype(jnp.bfloat16))

    params = {
        'patch_embed': {
            'g1': jnp.ones((1, patch_dim), jnp.float32),
            'b1': jnp.zeros((1, patch_dim), jnp.float32),
            'w': lin(next(ks), (patch_dim, dim)).astype(jnp.bfloat16),
            'bw': jnp.zeros((1, dim), jnp.float32),
            'g2': jnp.ones((1, dim), jnp.float32),
            'b2': jnp.zeros((1, dim), jnp.float32),
        },
        'pos_embedding': jax.random.normal(next(ks), (1, num_patches + 1, dim),
                                           jnp.float32),
        'cls_token': jax.random.normal(next(ks), (1, 1, dim), jnp.float32),
        'blocks': {
            'ga': jnp.ones((depth, 1, dim), jnp.float32),
            'ba': jnp.zeros((depth, 1, dim), jnp.float32),
            'wqkv': jnp.stack(wqkv),                         # (depth, dim, 3*inner)
            'wo': jnp.stack(wo),                             # (depth, inner, dim)
            'bo': jnp.zeros((depth, 1, dim), jnp.float32),
            'gf': jnp.ones((depth, 1, dim), jnp.float32),
            'bf': jnp.zeros((depth, 1, dim), jnp.float32),
            'w1': jnp.stack(w1),                             # (depth, dim, mlp)
            'b1': jnp.zeros((depth, 1, mlp_dim), jnp.float32),
            'w2': jnp.stack(w2),                             # (depth, mlp, dim)
            'b2': jnp.zeros((depth, 1, dim), jnp.float32),
        },
        'head': {'g': jnp.ones((1, dim), jnp.float32),
                 'b': jnp.zeros((1, dim), jnp.float32),
                 'w': head_w.astype(jnp.bfloat16),
                 'bw': jnp.zeros((1, nc_pad), jnp.float32)},
    }
    return params


if __name__ == "__main__":
    key = jax.random.PRNGKey(0)
    k_img, k_param = jax.random.split(key)

    B, C, H, W = 2, 4, 16, 16
    PATCH = 8
    DIM, DEPTH, HEADS, DIM_HEAD = 128, 2, 2, 64      # inner = 128 (lane-aligned)
    MLP_DIM, NUM_CLASSES = 256, 10

    num_patches = (H // PATCH) * (W // PATCH)        # 4 -> 5 tokens -> pad to 8
    patch_dim = C * PATCH * PATCH                    # 256

    img = jax.random.normal(k_img, (B, C, H, W), jnp.float32)
    params = init_vit_params(
        k_param, patch_dim=patch_dim, dim=DIM, depth=DEPTH, heads=HEADS,
        dim_head=DIM_HEAD, mlp_dim=MLP_DIM, num_classes=NUM_CLASSES,
        num_patches=num_patches)

    logits = vit_forward(img, params, patch_size=PATCH, heads=HEADS,
                         dim_head=DIM_HEAD, num_classes=NUM_CLASSES,
                         pool='cls')
    jax.block_until_ready(logits)
    assert logits.shape == (B, NUM_CLASSES)
    assert bool(jnp.all(jnp.isfinite(logits)))
    print("KERNEL_OK")
</pallas_src>

<mosaic_0001>
module attributes {stable_mosaic.version = 11 : i64} {
  func.func @embed_kernel(%arg0: i32, %arg1: memref<1x8x256xf32, #tpu.memory_space<vmem>>, %arg2: memref<1x256xf32, #tpu.memory_space<vmem>>, %arg3: memref<1x256xf32, #tpu.memory_space<vmem>>, %arg4: memref<256x128xbf16, #tpu.memory_space<vmem>>, %arg5: memref<1x128xf32, #tpu.memory_space<vmem>>, %arg6: memref<1x128xf32, #tpu.memory_space<vmem>>, %arg7: memref<1x128xf32, #tpu.memory_space<vmem>>, %arg8: memref<1x128xf32, #tpu.memory_space<vmem>>, %arg9: memref<8x128xf32, #tpu.memory_space<vmem>>, %arg10: memref<1x8x128xf32, #tpu.memory_space<vmem>>) attributes {dimension_semantics = [#tpu.dimension_semantics<parallel>], iteration_bounds = array<i64: 2>, scalar_prefetch = 0 : i64, scratch_operands = 0 : i64, tpu.core_type = #tpu.core_type<tc>, window_params = [{transform_indices = @transform_0, window_bounds = array<i64: 1, 8, 256>}, {pipeline_mode = #tpu.pipeline_mode<synchronous>, transform_indices = @transform_1, window_bounds = array<i64: 1, 256>}, {pipeline_mode = #tpu.pipeline_mode<synchronous>, transform_indices = @transform_2, window_bounds = array<i64: 1, 256>}, {pipeline_mode = #tpu.pipeline_mode<synchronous>, transform_indices = @transform_3, window_bounds = array<i64: 256, 128>}, {pipeline_mode = #tpu.pipeline_mode<synchronous>, transform_indices = @transform_4, window_bounds = array<i64: 1, 128>}, {pipeline_mode = #tpu.pipeline_mode<synchronous>, transform_indices = @transform_5, window_bounds = array<i64: 1, 128>}, {pipeline_mode = #tpu.pipeline_mode<synchronous>, transform_indices = @transform_6, window_bounds = array<i64: 1, 128>}, {pipeline_mode = #tpu.pipeline_mode<synchronous>, transform_indices = @transform_7, window_bounds = array<i64: 1, 128>}, {pipeline_mode = #tpu.pipeline_mode<synchronous>, transform_indices = @transform_8, window_bounds = array<i64: 8, 128>}, {transform_indices = @transform_9, window_bounds = array<i64: 1, 8, 128>}]} {
    %c0 = arith.constant 0 : index
    %c0_0 = arith.constant 0 : index
    %c0_1 = arith.constant 0 : index
    %0 = vector.load %arg1[%c0, %c0_0, %c0_1] : memref<1x8x256xf32, #tpu.memory_space<vmem>>, vector<1x8x256xf32>
    %1 = vector.shape_cast %0 : vector<1x8x256xf32> to vector<8x256xf32>
    %c0_2 = arith.constant 0 : index
    %c0_3 = arith.constant 0 : index
    %2 = vector.load %arg2[%c0_2, %c0_3] : memref<1x256xf32, #tpu.memory_space<vmem>>, vector<1x256xf32>
    %c0_4 = arith.constant 0 : index
    %c0_5 = arith.constant 0 : index
    %3 = vector.load %arg3[%c0_4, %c0_5] : memref<1x256xf32, #tpu.memory_space<vmem>>, vector<1x256xf32>
    %cst = arith.constant dense<0.000000e+00> : vector<8xf32>
    %4 = vector.multi_reduction <add>, %1, %cst [1] : vector<8x256xf32> to vector<8xf32>
    %5 = vector.shape_cast %4 : vector<8xf32> to vector<8x1xf32>
    %cst_6 = arith.constant 2.560000e+02 : f32
    %6 = vector.broadcast %cst_6 : f32 to vector<8x1xf32>
    %7 = arith.divf %5, %6 : vector<8x1xf32>
    %8 = vector.broadcast %7 : vector<8x1xf32> to vector<8x256xf32>
    %9 = arith.subf %1, %8 : vector<8x256xf32>
    %10 = arith.mulf %9, %9 : vector<8x256xf32>
    %cst_7 = arith.constant dense<0.000000e+00> : vector<8xf32>
    %11 = vector.multi_reduction <add>, %10, %cst_7 [1] : vector<8x256xf32> to vector<8xf32>
    %12 = vector.shape_cast %11 : vector<8xf32> to vector<8x1xf32>
    %cst_8 = arith.constant 2.560000e+02 : f32
    %13 = vector.broadcast %cst_8 : f32 to vector<8x1xf32>
    %14 = arith.divf %12, %13 : vector<8x1xf32>
    %15 = vector.broadcast %7 : vector<8x1xf32> to vector<8x256xf32>
    %16 = arith.subf %1, %15 : vector<8x256xf32>
    %cst_9 = arith.constant 9.99999974E-6 : f32
    %17 = vector.broadcast %cst_9 : f32 to vector<8x1xf32>
    %18 = arith.addf %14, %17 : vector<8x1xf32>
    %19 = math.rsqrt %18 : vector<8x1xf32>
    %20 = vector.broadcast %19 : vector<8x1xf32> to vector<8x256xf32>
    %21 = arith.mulf %16, %20 : vector<8x256xf32>
    %22 = vector.broadcast %2 : vector<1x256xf32> to vector<8x256xf32>
    %23 = arith.mulf %21, %22 : vector<8x256xf32>
    %24 = vector.broadcast %3 : vector<1x256xf32> to vector<8x256xf32>
    %25 = arith.addf %23, %24 : vector<8x256xf32>
    %26 = arith.truncf %25 : vector<8x256xf32> to vector<8x256xbf16>
    %c0_10 = arith.constant 0 : index
    %c0_11 = arith.constant 0 : index
    %27 = vector.load %arg4[%c0_10, %c0_11] : memref<256x128xbf16, #tpu.memory_space<vmem>>, vector<256x128xbf16>
    %cst_12 = arith.constant dense<0.000000e+00> : vector<8x128xf32>
    %28 = tpu.matmul %26, %27, %cst_12 {dimension_numbers = #tpu.dot_dimension_numbers<[1], [0], [0], [1], [0, 0, 1, 1], [], []>} : vector<8x256xbf16>, vector<256x128xbf16>, vector<8x128xf32> -> vector<8x128xf32>
    %c0_13 = arith.constant 0 : index
    %c0_14 = arith.constant 0 : index
    %29 = vector.load %arg5[%c0_13, %c0_14] : memref<1x128xf32, #tpu.memory_space<vmem>>, vector<1x128xf32>
    %30 = vector.broadcast %29 : vector<1x128xf32> to vector<8x128xf32>
    %31 = arith.addf %28, %30 : vector<8x128xf32>
    %c0_15 = arith.constant 0 : index
    %c0_16 = arith.constant 0 : index
    %32 = vector.load %arg6[%c0_15, %c0_16] : memref<1x128xf32, #tpu.memory_space<vmem>>, vector<1x128xf32>
    %c0_17 = arith.constant 0 : index
    %c0_18 = arith.constant 0 : index
    %33 = vector.load %arg7[%c0_17, %c0_18] : memref<1x128xf32, #tpu.memory_space<vmem>>, vector<1x128xf32>
    %cst_19 = arith.constant dense<0.000000e+00> : vector<8xf32>
    %34 = vector.multi_reduction <add>, %31, %cst_19 [1] : vector<8x128xf32> to vector<8xf32>
    %35 = vector.shape_cast %34 : vector<8xf32> to vector<8x1xf32>
    %cst_20 = arith.constant 1.280000e+02 : f32
    %36 = vector.broadcast %cst_20 : f32 to vector<8x1xf32>
    %37 = arith.divf %35, %36 : vector<8x1xf32>
    %38 = vector.broadcast %37 : vector<8x1xf32> to vector<8x128xf32>
    %39 = arith.subf %31, %38 : vector<8x128xf32>
    %40 = arith.mulf %39, %39 : vector<8x128xf32>
    %cst_21 = arith.constant dense<0.000000e+00> : vector<8xf32>
    %41 = vector.multi_reduction <add>, %40, %cst_21 [1] : vector<8x128xf32> to vector<8xf32>
    %42 = vector.shape_cast %41 : vector<8xf32> to vector<8x1xf32>
    %cst_22 = arith.constant 1.280000e+02 : f32
    %43 = vector.broadcast %cst_22 : f32 to vector<8x1xf32>
    %44 = arith.divf %42, %43 : vector<8x1xf32>
    %45 = vector.broadcast %37 : vector<8x1xf32> to vector<8x128xf32>
    %46 = arith.subf %31, %45 : vector<8x128xf32>
    %cst_23 = arith.constant 9.99999974E-6 : f32
    %47 = vector.broadcast %cst_23 : f32 to vector<8x1xf32>
    %48 = arith.addf %44, %47 : vector<8x1xf32>
    %49 = math.rsqrt %48 : vector<8x1xf32>
    %50 = vector.broadcast %49 : vector<8x1xf32> to vector<8x128xf32>
    %51 = arith.mulf %46, %50 : vector<8x128xf32>
    %52 = vector.broadcast %32 : vector<1x128xf32> to vector<8x128xf32>
    %53 = arith.mulf %51, %52 : vector<8x128xf32>
    %54 = vector.broadcast %33 : vector<1x128xf32> to vector<8x128xf32>
    %55 = arith.addf %53, %54 : vector<8x128xf32>
    %56 = tpu.iota {dimensions = array<i32: 0>} : vector<8x1xi32>
    %c0_i32 = arith.constant 0 : i32
    %57 = vector.broadcast %c0_i32 : i32 to vector<8x1xi32>
    %58 = arith.cmpi eq, %56, %57 : vector<8x1xi32>
    %c0_24 = arith.constant 0 : index
    %c0_25 = arith.constant 0 : index
    %59 = vector.load %arg8[%c0_24, %c0_25] : memref<1x128xf32, #tpu.memory_space<vmem>>, vector<1x128xf32>
    %60 = vector.shape_cast %58 : vector<8x1xi1> to vector<8x1xi1>
    %61 = vector.broadcast %60 : vector<8x1xi1> to vector<8x128xi1>
    %62 = vector.shape_cast %59 : vector<1x128xf32> to vector<1x128xf32>
    %63 = vector.broadcast %62 : vector<1x128xf32> to vector<8x128xf32>
    %64 = arith.select %61, %63, %55 : vector<8x128xi1>, vector<8x128xf32>
    %c5_i32 = arith.constant 5 : i32
    %65 = vector.broadcast %c5_i32 : i32 to vector<8x1xi32>
    %66 = arith.cmpi slt, %56, %65 : vector<8x1xi32>
    %cst_26 = arith.constant 0.000000e+00 : f32
    %67 = vector.shape_cast %66 : vector<8x1xi1> to vector<8x1xi1>
    %68 = vector.broadcast %67 : vector<8x1xi1> to vector<8x128xi1>
    %69 = vector.broadcast %cst_26 : f32 to vector<8x128xf32>
    %70 = arith.select %68, %64, %69 : vector<8x128xi1>, vector<8x128xf32>
    %c0_27 = arith.constant 0 : index
    %c0_28 = arith.constant 0 : index
    %71 = vector.load %arg9[%c0_27, %c0_28] : memref<8x128xf32, #tpu.memory_space<vmem>>, vector<8x128xf32>
    %72 = arith.addf %70, %71 : vector<8x128xf32>
    %c0_29 = arith.constant 0 : index
    %c0_30 = arith.constant 0 : index
    %c0_31 = arith.constant 0 : index
    %73 = vector.load %arg10[%c0_29, %c0_30, %c0_31] : memref<1x8x128xf32, #tpu.memory_space<vmem>>, vector<1x8x128xf32>
    %74 = vector.shape_cast %73 : vector<1x8x128xf32> to vector<8x128xf32>
    %75 = vector.shape_cast %72 : vector<8x128xf32> to vector<1x8x128xf32>
    tpu.vector_store %arg10[%c0_29, %c0_30, %c0_31], %75 {strides = array<i32>} : memref<1x8x128xf32, #tpu.memory_space<vmem>>, vector<1x8x128xf32>,
    return
  }
  func.func @transform_0(%arg0: i32) -> (i32, i32, i32) {
    %c0_i32 = arith.constant 0 : i32
    %c0_i32_0 = arith.constant 0 : i32
    %c0_i32_1 = arith.constant 0 : i32
    return %arg0, %c0_i32, %c0_i32_0 : i32, i32, i32
  }
  func.func @transform_1(%arg0: i32) -> (i32, i32) {
    %c0_i32 = arith.constant 0 : i32
    %c0_i32_0 = arith.constant 0 : i32
    %c0_i32_1 = arith.constant 0 : i32
    return %c0_i32, %c0_i32_0 : i32, i32
  }
  func.func @transform_2(%arg0: i32) -> (i32, i32) {
    %c0_i32 = arith.constant 0 : i32
    %c0_i32_0 = arith.constant 0 : i32
    %c0_i32_1 = arith.constant 0 : i32
    return %c0_i32, %c0_i32_0 : i32, i32
  }
  func.func @transform_3(%arg0: i32) -> (i32, i32) {
    %c0_i32 = arith.constant 0 : i32
    %c0_i32_0 = arith.constant 0 : i32
    %c0_i32_1 = arith.constant 0 : i32
    return %c0_i32, %c0_i32_0 : i32, i32
  }
  func.func @transform_4(%arg0: i32) -> (i32, i32) {
    %c0_i32 = arith.constant 0 : i32
    %c0_i32_0 = arith.constant 0 : i32
    %c0_i32_1 = arith.constant 0 : i32
    return %c0_i32, %c0_i32_0 : i32, i32
  }
  func.func @transform_5(%arg0: i32) -> (i32, i32) {
    %c0_i32 = arith.constant 0 : i32
    %c0_i32_0 = arith.constant 0 : i32
    %c0_i32_1 = arith.constant 0 : i32
    return %c0_i32, %c0_i32_0 : i32, i32
  }
  func.func @transform_6(%arg0: i32) -> (i32, i32) {
    %c0_i32 = arith.constant 0 : i32
    %c0_i32_0 = arith.constant 0 : i32
    %c0_i32_1 = arith.constant 0 : i32
    return %c0_i32, %c0_i32_0 : i32, i32
  }
  func.func @transform_7(%arg0: i32) -> (i32, i32) {
    %c0_i32 = arith.constant 0 : i32
    %c0_i32_0 = arith.constant 0 : i32
    %c0_i32_1 = arith.constant 0 : i32
    return %c0_i32, %c0_i32_0 : i32, i32
  }
  func.func @transform_8(%arg0: i32) -> (i32, i32) {
    %c0_i32 = arith.constant 0 : i32
    %c0_i32_0 = arith.constant 0 : i32
    %c0_i32_1 = arith.constant 0 : i32
    return %c0_i32, %c0_i32_0 : i32, i32
  }
  func.func @transform_9(%arg0: i32) -> (i32, i32, i32) {
    %c0_i32 = arith.constant 0 : i32
    %c0_i32_0 = arith.constant 0 : i32
    %c0_i32_1 = arith.constant 0 : i32
    return %arg0, %c0_i32, %c0_i32_0 : i32, i32, i32
  }
}

</mosaic_0001>

<bundles_post_ra>
// kernel: tpu_custom_call.1
= control target key start
LH: loop header
LB: loop body
LE: loop exit
PB: predicated region body
PF: predicated region fallthrough
CT: control target
= control target key end

     0   :  { %s1291_s0 = inlined_call_operand.hbm [shape: f32[2,8,256], index: 0, kind: input, shape index: {}]   ;;  %s1292_s1 = inlined_call_operand.hbm [shape: f32[1,256], index: 1, kind: input, shape index: {}]   ;;  %s1293_s2 = inlined_call_operand.vmem [shape: f32[1,256], index: 2, kind: input, shape index: {}]   ;;  %s1294_s3 = inlined_call_operand.hbm [shape: bf16[256,128], index: 3, kind: input, shape index: {}]   ;;  %s1295_s4 = inlined_call_operand.vmem [shape: f32[1,128], index: 4, kind: input, shape index: {}]   ;;  %s1296_s5 = inlined_call_operand.vmem [shape: f32[1,128], index: 5, kind: input, shape index: {}]   ;;  %s1297_s6 = inlined_call_operand.vmem [shape: f32[1,128], index: 6, kind: input, shape index: {}]   ;;  %s1298_s7 = inlined_call_operand.vmem [shape: f32[1,128], index: 7, kind: input, shape index: {}]   ;;  %s1299_s8 = inlined_call_operand.vmem [shape: f32[8,128], index: 8, kind: input, shape index: {}]   ;;  %s1300_s9 = inlined_call_operand.hbm [shape: f32[2,8,128], index: 9, kind: output, shape index: {}]  }
   0x1   :  { %1306 = sst [smem:[#allocation14_spill]] %s1292_s1 }
   0x2   :  { %1307 = sst [smem:[#allocation15_spill]] %s1294_s3 }
   0x3   :  { %14 = vsyncpa [#allocation3], 0 }
   0x4   :  { %16 = vsyncpa [#allocation3 + $0x1], 0 }
   0x5   :  { %17 = vsyncpa [#allocation6], 0 }
   0x6   :  { %18 = vsyncpa [#allocation4], 0 }
   0x7   :  { %20 = vsyncpa [#allocation4 + $0x1], 0  ;;  %s1107_s30 = smov 0   ;;  %s1109_s10 = smov 0  }
   0x8   :  { %s1111_s11 = smov 0   ;;  %s1113_s12 = smov 0  }
   0x9 LB: > { %1308 = sst [smem:[#allocation12_spill]] %s1045_s11  ;;  %s1128_s13 = sadd.s32 4294967295, %s1049_s12   ;;  %s1049_s12 = sphi %s1113_s12, %s1330_s12   ;;  %s1045_s11 = sphi %s1111_s11, %s1327_s11   ;;  %s1041_s10 = sphi %s1109_s10, %s1329_s10   ;;  %s1037_s30 = sphi %s1107_s30, %s1328_s30  }
   0xa   : > { %s752_s14 = sadd.s32 4294967294, %s1049_s12   ;;  %p46_p0 = scmp.ne.s32.totalorder %s1041_s10, %s1037_s30 }
   0xb   : > { %p1301_p1 = scmp.eq.s32.totalorder %s1128_s13, 0  ;;  %p244_p3 = scmp.eq.s32.totalorder %s752_s14, 1 }
   0xc   : > { %p753_p5 = scmp.ge.s32.totalorder %s1049_s12, 1  ;;  %p251_p7 = scmp.lt.s32.totalorder %s1049_s12, 3 }
   0xd   : > { %p1137_p4 = por %p1301_p1, %p46_p0  ;;  %p1142_p6 = por %p244_p3, %p46_p0 }
   0xe   : > { %p1147_p8 = pnand %p753_p5, %p251_p7  ;;  %s1051_s18 = smov [#allocation5]  }
   0xf   : > { %s1309_s15 = scalar_select %p1137_p4, 1, 0 }
  0x10   : > { %s1310_s16 = scalar_select %p1142_p6, 1, 0 }
  0x11   : > { %s1311_s17 = scalar_select %p1147_p8, 1, 0 }
  0x12   : > { %s264_s19 = sshll.u32 %s1051_s18, 4  ;;  %p824_p10 = pneg %p1147_p8  ;;  %s265_s19 = int_to_ptr.vmem [resolvable:$true] %s264_s19 }
  0x13   : > { %s1052_s20 = smov [#allocation7]   ;;  %s912_s23 = scalar_lea.vmem %s265_s19, 32 }
  0x14   : > { %s277_s21 = sshll.u32 %s1052_s20, 4  ;;  %p1156_p11 = pnand %p824_p10, %p1301_p1  ;;  %s278_s21 = int_to_ptr.vmem [resolvable:$true] %s277_s21 }
  0x15   : > { %p913_p13 = scmp.ne.s32.totalorder %s265_s19, %s912_s23  ;;  %p920_p5 = scmp.lt.s32.totalorder %s265_s19, %s265_s19 }
  0x16   : > { %p903_p12 = pneg %p1156_p11  ;;  %p921_p7 = scmp.lt.s32.totalorder %s912_s23, %s912_s23 }
  0x18   : > { %p915_p0 = pnand %p913_p13, %p903_p12  ;;  %p922_p9 = por %p921_p7, %p920_p5 }
  0x1a   : > { %p916_p3 = pneg %p915_p0 }
  0x1c   : > { %p923_p2 = pnand %p922_p9, %p916_p3 }
  0x1e   : > { %926 = shalt.err (!%p923_p2)
}
  0x1f   : > { %s1313_s1 = sld [smem:[#allocation14_spill]]  ;;  %s938_s26 = scalar_lea.vmem %s278_s21, 2048 }
  0x20   : > { %p939_p10 = scmp.ne.s32.totalorder %s278_s21, %s938_s26  ;;  %p946_p13 = scmp.lt.s32.totalorder %s278_s21, %s278_s21 }
  0x21   : > { %p947_p0 = scmp.lt.s32.totalorder %s938_s26, %s938_s26 }
  0x22   : > { %p941_p1 = pnand %p939_p10, %p903_p12 }
  0x23   : > { %p948_p4 = por %p947_p0, %p946_p13 }
  0x24   : > { %p942_p6 = pneg %p941_p1 }
  0x25   : > { %827 = dma.hbm_to_vmem [thread:$0]  (!%p1156_p11), %s1313_s1, 32, %s265_s19, [#allocation6]  }
  0x26   : > { %p949_p8 = pnand %p948_p4, %p942_p6 }
  0x28   : > { %952 = shalt.err (!%p949_p8)
}
  0x29   : > { %s1053_s27 = smov 64   ;;  %s1054_s28 = smov 4  }
  0x2a   : > { %s1314_s3 = sld [smem:[#allocation15_spill]]  ;;  %s1179_s18 = sadd.s32 1, %s1049_s12  }
  0x2b   : > { %s33_s19 = sadd.s32 1, %s1045_s11  ;;  %s30_s20 = ssub.s32 %s1049_s12, %s1179_s18 }
  0x2c   : > { %p40_p1 = scmp.ne.s32.totalorder %s1045_s11, %s1041_s10  ;;  %p31_p2 = scmp.eq.s32.totalorder %s30_s20, 0 }
  0x2d   : > { %p41_p4 = scmp.eq.s32.totalorder %s1049_s12, 0  ;;  %p1315_p6 = scmp.eq.s32.totalorder %s1128_s13, 1 }
  0x2e   : > { %p841_p9 = scmp.lt.s32.totalorder %s1049_s12, 2  ;;  %s306_s22 = sand.u32 1, %s1045_s11  }
  0x2f   : > { %p1189_p8 = por %p1315_p6, %p40_p1  ;;  %p42_p12 = por %p41_p4, %p40_p1 }
  0x30   : > { %830 = dma.hbm_to_vmem [thread:$0]  (!%p1156_p11), %s1314_s3, 2048, %s278_s21, [#allocation6], %s1053_s27, %s1053_s27, %s1054_s28  }
  0x31   : > { %s1316_s23 = scalar_select %p1189_p8, 1, 0 }
  0x32   : > { %s1195_s24 = scalar_select %p31_p2, %s1045_s11, %s33_s19  }
  0x33   : > { %s757_s25 = sshll.u32 %s306_s22, 4  ;;  %s789_s21 = sshll.u32 %s1049_s12, 8 }
  0x34   : > { %1317 = sst [smem:[#allocation13_spill]] %s1195_s24  ;;  %s1202_s28 = scalar_lea.hbm %s1291_s0, %s789_s21 }
  0x35   : > { %s310_s29 = scalar_lea.vmem [#allocation2], %s757_s25  ;;  %p1204_p11 = pnand %p841_p9, %p42_p12 }
  0x36   : > { %s318_s14 = sshll.u32 %s310_s29, 4  ;;  %s307_s19 = scalar_lea.sflag [#allocation3], %s306_s22  ;;  %s319_s14 = int_to_ptr.vmem [resolvable:$true] %s318_s14 }
  0x37   : > { %s953_s1 = scalar_lea.hbm %s1202_s28, 256  ;;  %p955_p5 = pneg %p1204_p11 }
  0x38   : > { %p954_p3 = scmp.ne.s32.totalorder %s1202_s28, %s953_s1  ;;  %s958_s27 = scalar_lea.hbm %s1291_s0, 512 }
  0x39   : > { %p959_p13 = scmp.lt.s32.totalorder %s1202_s28, %s1291_s0  ;;  %p960_p0 = scmp.lt.s32.totalorder %s958_s27, %s953_s1 }
  0x3a   : > { %p956_p7 = pnand %p955_p5, %p954_p3 }
  0x3b   : > { %p961_p1 = por %p960_p0, %p959_p13 }
  0x3c   : > { %p957_p10 = pneg %p956_p7 }
  0x3e   : > { %p962_p2 = pnand %p961_p1, %p957_p10 }
  0x40   : > { %965 = shalt.err (!%p962_p2)
}
  0x41   : > { %s966_s29 = scalar_lea.vmem %s319_s14, 256  ;;  %s1055_s22 = smov [#allocation2]  }
  0x42   : > { %p967_p4 = scmp.ne.s32.totalorder %s319_s14, %s966_s29  ;;  %s971_s24 = sshll.u32 %s1055_s22, 4  ;;  %s972_s24 = int_to_ptr.vmem [resolvable:$false] %s971_s24 }
  0x43   : > { %s973_s11 = scalar_lea.vmem %s972_s24, 512  ;;  %p974_p12 = scmp.lt.s32.totalorder %s319_s14, %s972_s24 }
  0x44   : > { %p969_p6 = pnand %p967_p4, %p955_p5  ;;  %p975_p3 = scmp.lt.s32.totalorder %s973_s11, %s966_s29 }
  0x46   : > { %p970_p9 = pneg %p969_p6  ;;  %p976_p7 = por %p975_p3, %p974_p12 }
  0x48   : > { %p977_p8 = pnand %p976_p7, %p970_p9 }
  0x4a   : > { %980 = shalt.err (!%p977_p8)
}
  0x4b   : > { %834 = dma.hbm_to_vmem [thread:$0]  (!%p1204_p11), %s1202_s28, 256, %s319_s14, %s307_s19  }
  0x4c   : > { %p1319_p10 = scmp.ne.s32.totalorder %s1311_s17, 0 }
  0x4d   : > { %s1225_s1 = sand.u32 (!%p1319_p10), 1, %s1041_s10   ;;  %p1320_p5 = scmp.ne.s32.totalorder (!%p1319_p10), %s1309_s15, 0 }
  0x4e   : > { %327 = sbr.rel (%p1319_p10) target bundleno = 923 (0x39b), region = 56  ;;  %s761_s3 = sshll.u32 (!%p1319_p10), %s1225_s1, 4 }
  0x4f   : > { %s330_s21 = scalar_lea.sflag (!%p1319_p10), [#allocation3], %s1225_s1  ;;  %s333_s24 = scalar_lea.vmem (!%p1319_p10), [#allocation2], %s761_s3 }
  0x53   : > { %1024 = dma.done.wait (%p1320_p5), %s330_s21, 256  }
  0x54   : > { %1026 = vsyncadd (%p1320_p5), %s330_s21, 4294967040  ;;  %p1321_p8 = scmp.eq.s32.totalorder %s1128_s13, 0 }
  0x56   : > { %1028 = dma.done.wait (%p1321_p8), [#allocation6], 2080   ;;  %p1322_p11 = pmov %p1321_p8 }
  0x57   : > { %v377_v0 = vld [vmem:[%s333_s24] sm:$0xff]  ;;  %v378_v1 = vld [vmem:[%s333_s24 + $0x8] sm:$0xff]  ;;  %v399_v29 = vlaneseq  ;;  %s764_s19 = sshll.u32 %s1225_s1, 3  ;;  %s786_s21 = sshll.u32 %s1128_s13, 7 }
  0x58   : > { %1030 = vsyncadd (%p1322_p11), [#allocation6], 4294965216  ;;  %v381_v2 = vadd.f32 %v378_v1, %v377_v0  ;;  %v881_v3 = vld [vmem:[#allocation7 + $0x78] sm:$0xff]   ;;  %v883_v5 = vld [vmem:[#allocation7 + $0x70] sm:$0xff]   ;;  %s375_s24 = scalar_lea.vmem [#allocation8], %s764_s19  ;;  %s661_s28 = scalar_lea.hbm %s1300_s9, %s786_s21 }
  0x59   : > { %v882_v4 = vld [vmem:[#allocation7 + $0x38] sm:$0xff]   ;;  %790 = vmatprep.subr.bf16.mxu0 %v881_v3  ;;  %v884_v13 = vld [vmem:[#allocation7 + $0x30] sm:$0xff]   ;;  %v885_v14 = vld [vmem:[#allocation7 + $0x68] sm:$0xff]   ;;  %v400_v30 = vshrl.u32 %v399_v29, 7  ;;  %s663_s11 = sshll.u32 %s375_s24, 4  ;;  %s650_s14 = scalar_lea.sflag [#allocation4], %s1225_s1  ;;  %s664_s11 = int_to_ptr.vmem [resolvable:$true] %s663_s11 }
  0x5a   : > { %382 = vadd.xlane.f32.xlu0 %v381_v2  ;;  %791 = vmatpush3.bf16.msra.mxu0 %v882_v4  ;;  %v886_v15 = vld [vmem:[#allocation7 + $0x28] sm:$0xff]   ;;  %v887_v16 = vld [vmem:[#allocation7 + $0x60] sm:$0xff]   ;;  %v889_v18 = vld [vmem:[#allocation7 + $0x58] sm:$0xff]   ;;  %s981_s20 = scalar_lea.vmem %s664_s11, 128  ;;  %p1323_p0 = scmp.ne.s32.totalorder %s1316_s23, 0 }
  0x5b   : > { %792 = vmatprep.subr.bf16.mxu0 %v883_v5  ;;  %v888_v17 = vld [vmem:[#allocation7 + $0x20] sm:$0xff]   ;;  %v890_v19 = vld [vmem:[#allocation7 + $0x18] sm:$0xff]   ;;  %v891_v20 = vld [vmem:[#allocation7 + $0x50] sm:$0xff]   ;;  %v401_v31 = vsub.s32 0, %v400_v30  ;;  %v405_v32 = vsub.s32 1, %v400_v30  ;;  %vm631_vm0 = vcmp.eq.s32.totalorder %v400_v30, 0  ;;  %p982_p13 = scmp.ne.s32.totalorder %s664_s11, %s981_s20 }
  0x5c   : > { %v892_v21 = vld [vmem:[#allocation7 + $0x10] sm:$0xff]   ;;  %v893_v22 = vld [vmem:[#allocation7 + $0x48] sm:$0xff]   ;;  %v895_v24 = vld [vmem:[#allocation7 + $0x40] sm:$0xff]   ;;  %vm642_vm1 = vcmp.lt.s32.totalorder %v400_v30, 5  ;;  %s1056_s26 = smov [#allocation8]  }
  0x5d   : > { %v894_v23 = vld [vmem:[#allocation7 + $0x8] sm:$0xff]   ;;  %v896_v25 = vld [vmem:[#allocation7] sm:$0xff]   ;;  %v379_v33 = vld [vmem:[#allocation5] sm:$0x3]  ;;  %p983_p1 = pnand %p982_p13, %p1323_p0  ;;  %s985_s27 = sshll.u32 %s1056_s26, 4  ;;  %s986_s27 = int_to_ptr.vmem [resolvable:$false] %s985_s27 }
  0x5e   : > { %793 = vmatpush3.bf16.msra.mxu0 %v884_v13  ;;  %v380_v34 = vld [vmem:[%s1293_s2] sm:$0x3]  ;;  %v402_v35 = vrot.slane %v379_v33, %v401_v31  ;;  %v406_v36 = vrot.slane %v379_v33, %v405_v32  ;;  %s987_s13 = scalar_lea.vmem %s986_s27, 256  ;;  %p988_p4 = scmp.lt.s32.totalorder %s664_s11, %s986_s27 }
  0x5f   : > { %794 = vmatprep.subr.bf16.mxu0 %v885_v14  ;;  %v415_v39 = vrot.slane %v380_v34, %v401_v31  ;;  %v419_v40 = vrot.slane %v380_v34, %v405_v32  ;;  %v765_v50 = vld [vmem:[%s1295_s4] ss:$0 sm:$0xff]  ;;  %p984_p2 = pneg %p983_p1  ;;  %p989_p6 = scmp.lt.s32.totalorder %s987_s13, %s981_s20 }
  0x60   : > { %v782_v63 = vld [vmem:[%s1296_s5] ss:$0 sm:$0xff] }
  0x61   : > { %v784_v3 = vld [vmem:[%s1298_s7] ss:$0 sm:$0xff]  ;;  %p990_p9 = por %p989_p6, %p988_p4 }
  0x62   : > { %795 = vmatpush3.bf16.msra.mxu0 %v886_v15  ;;  %v646_v5 = vld [vmem:[%s1299_s8] sm:$0xff] }
  0x63   : > { %796 = vmatprep.subr.bf16.mxu0 %v887_v16  ;;  %p991_p12 = pnand %p990_p9, %p984_p2 }
  0x66   : > { %797 = vmatpush3.bf16.msra.mxu0 %v888_v17 }
  0x67   : > { %798 = vmatprep.subr.bf16.mxu0 %v889_v18 }
  0x6a   : > { %799 = vmatpush3.bf16.msra.mxu0 %v890_v19 }
  0x6b   : > { %800 = vmatprep.subr.bf16.mxu0 %v891_v20 }
  0x6e   : > { %801 = vmatpush3.bf16.msra.mxu0 %v892_v21 }
  0x6f   : > { %802 = vmatprep.subr.bf16.mxu0 %v893_v22 }
  0x72   : > { %803 = vmatpush3.bf16.msra.mxu0 %v894_v23 }
  0x73   : > { %804 = vmatprep.subr.bf16.mxu0 %v895_v24 }
  0x76   : > { %805 = vmatpush3.bf16.msra.mxu0 %v896_v25 }
  0xe3   : > { %v383_v6 = vpop.xlane.xlu0 %382 }
  0xe4   : > { %v385_v7 = vmul.f32 0.00390625, %v383_v6 }
  0xe6   : > { %v386_v8 = vsub.f32 %v377_v0, %v385_v7  ;;  %v387_v9 = vsub.f32 %v378_v1, %v385_v7  ;;  %v783_v1 = vld [vmem:[%s1297_s6] ss:$0 sm:$0xff] }
  0xe8   : > { %v388_v10 = vmul.f32 %v386_v8, %v386_v8  ;;  %v389_v11 = vmul.f32 %v387_v9, %v387_v9 }
  0xea   : > { %v390_v12 = vadd.f32 %v389_v11, %v388_v10 }
  0xec   : > { %391 = vadd.xlane.f32.xlu0 %v390_v12 }
 0x175   : > { %v392_v26 = vpop.xlane.xlu0 %391 }
 0x176   : > { %v393_v27 = vmul.f32 0.00390625, %v392_v26 }
 0x178   : > { %v394_v28 = vadd.f32 1e-05, %v393_v27 }
 0x17a   : > { %897 = vrsqrt.f32 %v394_v28 }
 0x187   : > { %v898_v37 = vpop.eup %897 }
 0x188   : > { %v397_v38 = vmul.f32 %v898_v37, %v387_v9  ;;  %v396_v41 = vmul.f32 %v898_v37, %v386_v8 }
 0x18a   : > { %v410_v42 = vmul.f32 %v406_v36, %v397_v38  ;;  %v409_v43 = vmul.f32 %v402_v35, %v396_v41 }
 0x18c   : > { %v423_v44 = vadd.f32 %v419_v40, %v410_v42  ;;  %v422_v45 = vadd.f32 %v415_v39, %v409_v43 }
 0x18e   : > { %v425_v46 = vpack.c.bf16 %v423_v44, %v423_v44  ;;  %v424_v47 = vpack.c.bf16 %v422_v45, %v422_v45 }
 0x190   : > { %593 = vmatprep.mubr.bf16.mxu0 %v425_v46 }
 0x191   : > { %594 = vmatmul.mubr.bf16.vlgmr.msra.gmra.mxu0 %v424_v47 }
 0x251   : > { %v806_v48 = vpop.f32.mrf.mxu0 }
 0x253   : > { %v807_v49 = vpop.f32.mrf.mxu0 }
 0x254   : > { %v808_v51 = vadd.f32 %v807_v49, %v806_v48 }
 0x255   : > { %v809_v52 = vpop.f32.mrf.mxu0 }
 0x256   : > { %v596_v53 = vadd.f32 %v808_v51, %v765_v50 }
 0x257   : > { %v810_v54 = vpop.f32.mrf.mxu0 }
 0x258   : > { %603 = vadd.xlane.f32.xlu1 %v596_v53 }
 0x2e1   : > { %v604_v55 = vpop.xlane.xlu1 %603 }
 0x2e2   : > { %v606_v56 = vmul.f32 0.0078125, %v604_v55 }
 0x2e4   : > { %v607_v57 = vsub.f32 %v596_v53, %v606_v56 }
 0x2e6   : > { %v608_v58 = vmul.f32 %v607_v57, %v607_v57 }
 0x2e8   : > { %609 = vadd.xlane.f32.xlu1 %v608_v58 }
 0x371   : > { %v610_v59 = vpop.xlane.xlu1 %609 }
 0x372   : > { %v611_v60 = vmul.f32 0.0078125, %v610_v59 }
 0x374   : > { %v612_v61 = vadd.f32 1e-05, %v611_v60 }
 0x376   : > { %899 = vrsqrt.f32 %v612_v61 }
 0x383   : > { %v900_v62 = vpop.eup %899 }
 0x384   : > { %v614_v0 = vmul.f32 %v900_v62, %v607_v57 }
 0x386   : > { %v621_v2 = vmul.f32 %v782_v63, %v614_v0 }
 0x388   : > { %v628_v4 = vadd.f32 %v783_v1, %v621_v2 }
 0x38a   : > { %v641_v6 = vsel %vm631_vm0, %v784_v3, %v628_v4 }
 0x38b   : > { %v645_v7 = vsel %vm642_vm1, %v641_v6, 0.0 }
 0x38c   : > { %v647_v8 = vadd.f32 %v646_v5, %v645_v7 }
 0x38e   : > { %648 = vst [vmem:[%s375_s24] sm:$0xff] %v647_v8 }
 0x38f   : > { %994 = shalt.err (!%p991_p12)
}
 0x390   : > { %s995_s19 = scalar_lea.hbm %s661_s28, 128  ;;  %s999_s29 = scalar_lea.hbm %s1300_s9, 256 }
 0x391   : > { %p996_p3 = scmp.ne.s32.totalorder %s661_s28, %s995_s19  ;;  %p1000_p5 = scmp.lt.s32.totalorder %s661_s28, %s1300_s9 }
 0x392   : > { %p1001_p8 = scmp.lt.s32.totalorder %s999_s29, %s995_s19 }
 0x393   : > { %p997_p7 = pnand %p996_p3, %p1323_p0 }
 0x394   : > { %p1002_p11 = por %p1001_p8, %p1000_p5 }
 0x395   : > { %p998_p10 = pneg %p997_p7 }
 0x397   : > { %p1003_p13 = pnand %p1002_p11, %p998_p10 }
 0x399   : > { %1006 = shalt.err (!%p1003_p13)
}
 0x39a   : > { %822 = dma.vmem_to_hbm [thread:$0]  (%p1323_p0), %s664_s11, 128, %s661_s28, %s650_s14  }
 0x39b PF: > { %s675_s21 = sand.u32 1, %s1037_s30   ;;  %p1324_p1 = scmp.ne.s32.totalorder %s1310_s16, 0 }
 0x39c   : > { %p1325_p2 = scmp.ge.s32.totalorder %s1049_s12, 2  ;;  %s676_s24 = scalar_lea.sflag [#allocation4], %s675_s21 }
 0x39e   : > { %p836_p4 = pnand %p1325_p2, %p1324_p1 }
 0x3a0   : > { %p837_p6 = pneg %p836_p4 }
 0x3a2   : > { %1032 = dma.done.wait (%p837_p6), %s676_s24, 128  }
 0x3a3   : > { %1034 = vsyncadd (%p837_p6), %s676_s24, 4294967168  ;;  %s1326_s15 = sld [smem:[#allocation12_spill]]  ;;  %p23_p9 = scmp.ge.s32.totalorder %s1179_s18, 4  }
 0x3a4   : > { %s1327_s11 = sld [smem:[#allocation13_spill]]  ;;  %s1328_s30 = smov %s1041_s10 }
 0x3a5   : > { %s1330_s12 = smov %s1179_s18  ;;  %25 = sbr.rel (!%p23_p9) target bundleno = 9 (0x9), region = 109 }
 0x3a9   : > { %s1329_s10 = smov %s1326_s15 }
 0x3aa   :  { %681 = vsyncpa [#allocation3], 1 }
 0x3ab   :  { %683 = vsyncpa [#allocation3 + $0x1], 1 }
 0x3ac   :  { %684 = vsyncpa [#allocation6], 1 }
 0x3ad   :  { %685 = vsyncpa [#allocation4], 1 }
 0x3ae   :  { %687 = vsyncpa [#allocation4 + $0x1], 1 }

</bundles_post_ra>
